<compile_context>
chip_gen: v5e
topology: v5e:2x2
jax: 0.10.0
libtpu: 0.0.40
codegen_flags: <defaults>
</compile_context>

<pallas_src>
import functools

import jax
import jax.numpy as jnp
from jax import lax
from jax.experimental import pallas as pl
from jax.experimental.pallas import tpu as pltpu

_LANE = 128


def _elementwise_loss(x, gan_mode, target):
    """Per-element GAN loss in f32. `gan_mode`/`target` are Python-static."""
    if gan_mode == "vanilla":
        # BCEWithLogitsLoss, numerically stable form:
        #   max(x, 0) - x*y + log1p(exp(-|x|))
        # NOTE: softplus term kept in f32; bf16 EUP evaluation is an optional
        # v6e/v7x tweak only if a trace shows the EUP binding (not applied).
        return jnp.maximum(x, 0.0) - x * target + jnp.log1p(jnp.exp(-jnp.abs(x)))
    if gan_mode == "lsgan":
        d = x - target
        return d * d
    if gan_mode == "wgan":
        # Sign (real -> -mean, fake -> +mean) is applied in the wrapper.
        return x
    raise NotImplementedError(f"Unrecognised gan_mode: {gan_mode}")


def _partial_sums(elt, acc_rows):
    """(tile_rows,128) -> (acc_rows,128): acc_rows independent VPU add chains."""
    if elt.shape[0] == acc_rows:
        return elt
    return jnp.sum(elt.reshape(-1, acc_rows, elt.shape[1]), axis=0)


def _gan_loss_kernel(x_ref, acc_ref, *, gan_mode, target, acc_rows,
                     needs_mask, valid_rows_last):
    """One (tile_rows, 128) tile -> accumulate into the per-core (acc_rows,128)
    f32 accumulator that lives in the output block (resident across the
    "arbitrary" reduction axis).  All keyword args are Python-static."""
    i = pl.program_id(1)          # tile index within this core's shard

    @pl.when(i == 0)
    def _init():
        acc_ref[...] = jnp.zeros_like(acc_ref)

    x = x_ref[...].astype(jnp.float32)
    elt = _elementwise_loss(x, gan_mode, target)

    if not needs_mask:
        acc_ref[...] += _partial_sums(elt, acc_rows)
    else:
        # Only the globally-last tile is ragged (no phantom tiles exist).
        c = pl.program_id(0)
        is_last = jnp.logical_and(c == pl.num_programs(0) - 1,
                                  i == pl.num_programs(1) - 1)

        @pl.when(jnp.logical_not(is_last))
        def _full_tile():
            acc_ref[...] += _partial_sums(elt, acc_rows)

        @pl.when(is_last)
        def _ragged_tile():
            # Rows past the array end hold garbage -> select (not multiply),
            # so NaN/Inf from exp/log on garbage never propagates.
            row = lax.broadcasted_iota(jnp.int32, elt.shape, 0)
            masked = jnp.where(row < valid_rows_last, elt, 0.0)
            acc_ref[...] += _partial_sums(masked, acc_rows)


def _device_kind():
    try:
        return jax.devices()[0].device_kind.lower()
    except Exception:  # pragma: no cover - CPU/interpret fallback
        return ""


def _round_down(v, m):
    return (v // m) * m


def _round_up(v, m):
    return -(-v // m) * m


def gan_loss(prediction, target_is_real, *, gan_mode="vanilla",
             real_label=1.0, fake_label=0.0, max_tile_rows=None,
             num_cores=None):
    """Pallas equivalent of GANLoss(gan_mode, real_label, fake_label)(pred, t).

    `target_is_real` and `gan_mode` are Python-static (as in the PyTorch
    module).  Returns a scalar float32 loss (mean over all elements).
    `max_tile_rows` / `num_cores` override the generation-aware defaults
    (useful for testing the multi-tile / 2-core paths on any chip).
    """
    x = jnp.asarray(prediction)
    if not jnp.issubdtype(x.dtype, jnp.floating):
        x = x.astype(jnp.float32)

    n = int(x.size)
    if n == 0:
        raise ValueError("empty prediction")

    target = float(real_label) if target_is_real else float(fake_label)
    if gan_mode == "wgan":
        scale = -1.0 if target_is_real else 1.0
    elif gan_mode in ("vanilla", "lsgan"):
        scale = 1.0
    else:
        raise NotImplementedError(f"Unrecognised gan_mode: {gan_mode}")

    flat = x.reshape(-1)
    rows = n // _LANE
    tail_n = n - rows * _LANE

    # --- tail (< 128 elements): negligible, pure JAX -------------------------
    tail_sum = None
    if tail_n:
        tail_sum = jnp.sum(_elementwise_loss(
            flat[rows * _LANE:].astype(jnp.float32), gan_mode, target))

    if rows < 8:
        # Too small to be worth a kernel launch.
        total = jnp.sum(_elementwise_loss(
            flat.astype(jnp.float32), gan_mode, target))
        return (total * (scale / float(n))).astype(jnp.float32)

    # --- generation-aware tiling ----------------------------------------------
    kind = _device_kind()
    is_v7 = ("v7" in kind) or ("7x" in kind)        # dual-TensorCore chips
    itemsize = int(x.dtype.itemsize)
    dtype_sublane = max(8, 32 // max(itemsize, 1))  # f32:8, bf16:16, int8:32

    # Block sized so the in-kernel f32 working set is ~4 MiB on v7x (faster
    # HBM -> amortize per-step overhead) and ~2 MiB on v5e/v6e.
    work_bytes = (4 << 20) if is_v7 else (2 << 20)
    target_rows = max(dtype_sublane, work_bytes // (_LANE * 4))
    if max_tile_rows is not None:
        target_rows = max(dtype_sublane, min(target_rows, int(max_tile_rows)))

    tile_rows = min(target_rows, rows)
    for mult in (max(32, dtype_sublane), dtype_sublane, 8):
        if tile_rows >= mult:
            tile_rows = _round_down(tile_rows, mult)
            break
    n_tiles = -(-rows // tile_rows)

    # 2-way TensorCore shard only where a second core exists (v7x).
    n_cores = int(num_cores) if num_cores is not None else (2 if is_v7 else 1)
    n_cores = max(1, min(n_cores, n_tiles))
    if n_cores == 2:
        # Shrink tile_rows until the tile count splits evenly across cores ->
        # no phantom tiles (no wasted DMA, no extra masking, balanced load).
        while n_tiles % n_cores:
            new_rows = max(dtype_sublane,
                           _round_up(-(-rows // (n_tiles + 1)), dtype_sublane))
            if new_rows >= tile_rows:
                n_cores = 1
                break
            tile_rows = new_rows
            n_tiles = -(-rows // tile_rows)
    tiles_per_core = n_tiles // n_cores

    # Widest partial-sum accumulator that divides the tile (reduction ILP).
    acc_rows = 8
    for cand in (32, 16, 8):
        if tile_rows % cand == 0:
            acc_rows = cand
            break

    needs_mask = (n_tiles * tile_rows) != rows
    valid_rows_last = rows - (n_tiles - 1) * tile_rows

    # 128-aligned prefix.  Free reshape when n % 128 == 0 (typical conv
    # shapes); for ragged sizes XLA materializes the prefix once, which is
    # still cheaper/simpler than padding the full tensor + analytic fixup.
    main = flat[: rows * _LANE].reshape(rows, _LANE)

    in_block = tile_rows * _LANE * itemsize
    f32_block = tile_rows * _LANE * 4
    vmem_limit = int(min(48 << 20, max(24 << 20, 3 * in_block + 5 * f32_block)))

    main_n = rows * _LANE
    if gan_mode == "vanilla":
        flops, transcendentals = 7 * main_n, 2 * main_n
    elif gan_mode == "lsgan":
        flops, transcendentals = 3 * main_n, 0
    else:
        flops, transcendentals = main_n, 0
    cost = pl.CostEstimate(
        flops=flops, transcendentals=transcendentals,
        bytes_accessed=main_n * itemsize + n_cores * acc_rows * _LANE * 4)

    kernel = functools.partial(
        _gan_loss_kernel, gan_mode=gan_mode, target=target, acc_rows=acc_rows,
        needs_mask=needs_mask, valid_rows_last=valid_rows_last)

    partials = pl.pallas_call(
        kernel,
        out_shape=jax.ShapeDtypeStruct((n_cores, acc_rows, _LANE), jnp.float32),
        grid=(n_cores, tiles_per_core),
        in_specs=[pl.BlockSpec((tile_rows, _LANE),
                               lambda c, i: (c * tiles_per_core + i, 0))],
        out_specs=pl.BlockSpec((None, acc_rows, _LANE), lambda c, i: (c, 0, 0)),
        compiler_params=pltpu.CompilerParams(
            dimension_semantics=("parallel", "arbitrary"),
            vmem_limit_bytes=vmem_limit),
        cost_estimate=cost,
    )(main)

    total = jnp.sum(partials)
    if tail_sum is not None:
        total = total + tail_sum
    return (total * (scale / float(n))).astype(jnp.float32)


def _gan_loss_ref(prediction, target_is_real, *, gan_mode="vanilla",
                  real_label=1.0, fake_label=0.0):
    """Pure-JAX reference mirroring the PyTorch semantics."""
    x = jnp.asarray(prediction, jnp.float32)
    if gan_mode in ("vanilla", "lsgan"):
        y = jnp.full_like(x, real_label if target_is_real else fake_label)
        if gan_mode == "vanilla":
            elt = jnp.maximum(x, 0.0) - x * y + jnp.log1p(jnp.exp(-jnp.abs(x)))
        else:
            elt = (x - y) ** 2
        return jnp.mean(elt)
    elif gan_mode == "wgan":
        return -jnp.mean(x) if target_is_real else jnp.mean(x)
    raise NotImplementedError(gan_mode)


if __name__ == "__main__":
    key = jax.random.PRNGKey(0)
    # Discriminator logits (NCHW, raw — no sigmoid), small synthetic shape.
    pred = jax.random.normal(key, (2, 4, 16, 16), dtype=jnp.float32)

    cases = [
        ("vanilla", True), ("vanilla", False),
        ("lsgan", True), ("lsgan", False),
        ("wgan", True), ("wgan", False),
    ]

    def check(p, **kw):
        for mode, is_real in cases:
            got = jax.block_until_ready(gan_loss(p, is_real, gan_mode=mode, **kw))
            want = _gan_loss_ref(p, is_real, gan_mode=mode)
            assert jnp.allclose(got, want, rtol=1e-5, atol=1e-5), \
                (mode, is_real, got, want, kw)

    # f32 input, single-tile path with generation-aware defaults.
    check(pred)

    # bf16 input: kernel streams bf16 (half the HBM bytes) and upcasts in VMEM.
    check(pred.astype(jnp.bfloat16))

    # Forced small tiles, single core: multi-tile grid + ragged final tile.
    pred_odd = jax.random.normal(jax.random.PRNGKey(1), (1, 2, 40, 128),
                                 dtype=jnp.float32)
    check(pred_odd, max_tile_rows=32, num_cores=1)

    # Forced small tiles, 2-core shard (v7x path): even, phantom-free split.
    check(pred_odd, max_tile_rows=32, num_cores=2)

    # Ragged element count (not a multiple of 128): aligned prefix + JAX tail.
    pred_ragged = jax.random.normal(jax.random.PRNGKey(2), (2, 3, 19, 17),
                                    dtype=jnp.float32)
    check(pred_ragged)
    check(pred_ragged, num_cores=2)

    print("KERNEL_OK")
</pallas_src>

<mosaic_0001>
module attributes {stable_mosaic.version = 11 : i64} {
  func.func @_gan_loss_kernel(%arg0: i32, %arg1: i32, %arg2: memref<16x128xf32, #tpu.memory_space<vmem>>, %arg3: memref<1x16x128xf32, #tpu.memory_space<vmem>>) attributes {dimension_semantics = [#tpu.dimension_semantics<parallel>, #tpu.dimension_semantics<arbitrary>], iteration_bounds = array<i64: 1, 1>, scalar_prefetch = 0 : i64, scratch_operands = 0 : i64, tpu.core_type = #tpu.core_type<tc>, window_params = [{transform_indices = @transform_0, window_bounds = array<i64: 16, 128>}, {transform_indices = @transform_1, window_bounds = array<i64: 1, 16, 128>}]} {
    %c0_i32 = arith.constant 0 : i32
    %0 = arith.cmpi eq, %arg1, %c0_i32 : i32
    %1 = arith.extui %0 : i1 to i32
    %c0_i32_0 = arith.constant 0 : i32
    %2 = arith.cmpi ne, %1, %c0_i32_0 : i32
    scf.if %2 {
      %cst_10 = arith.constant 0.000000e+00 : f32
      %21 = vector.broadcast %cst_10 : f32 to vector<16x128xf32>
      %c0_11 = arith.constant 0 : index
      %c0_12 = arith.constant 0 : index
      %c0_13 = arith.constant 0 : index
      %22 = vector.load %arg3[%c0_11, %c0_12, %c0_13] : memref<1x16x128xf32, #tpu.memory_space<vmem>>, vector<1x16x128xf32>
      %23 = vector.shape_cast %22 : vector<1x16x128xf32> to vector<16x128xf32>
      %24 = vector.shape_cast %21 : vector<16x128xf32> to vector<1x16x128xf32>
      tpu.vector_store %arg3[%c0_11, %c0_12, %c0_13], %24 {strides = array<i32>} : memref<1x16x128xf32, #tpu.memory_space<vmem>>, vector<1x16x128xf32>,
    } else {
    }
    %c0 = arith.constant 0 : index
    %c0_1 = arith.constant 0 : index
    %3 = vector.load %arg2[%c0, %c0_1] : memref<16x128xf32, #tpu.memory_space<vmem>>, vector<16x128xf32>
    %cst = arith.constant 0.000000e+00 : f32
    %4 = vector.broadcast %cst : f32 to vector<16x128xf32>
    %5 = arith.maximumf %3, %4 : vector<16x128xf32>
    %cst_2 = arith.constant 1.000000e+00 : f32
    %6 = vector.broadcast %cst_2 : f32 to vector<16x128xf32>
    %7 = arith.mulf %3, %6 : vector<16x128xf32>
    %8 = arith.subf %5, %7 : vector<16x128xf32>
    %9 = math.absf %3 : vector<16x128xf32>
    %cst_3 = arith.constant 0.000000e+00 : f32
    %10 = vector.broadcast %cst_3 : f32 to vector<16x128xf32>
    %11 = arith.subf %10, %9 : vector<16x128xf32>
    %12 = math.exp %11 : vector<16x128xf32>
    %13 = math.log1p %12 : vector<16x128xf32>
    %14 = arith.addf %8, %13 : vector<16x128xf32>
    %c0_4 = arith.constant 0 : index
    %c0_5 = arith.constant 0 : index
    %c0_6 = arith.constant 0 : index
    %15 = vector.load %arg3[%c0_4, %c0_5, %c0_6] : memref<1x16x128xf32, #tpu.memory_space<vmem>>, vector<1x16x128xf32>
    %16 = vector.shape_cast %15 : vector<1x16x128xf32> to vector<16x128xf32>
    %17 = arith.addf %16, %14 : vector<16x128xf32>
    %c0_7 = arith.constant 0 : index
    %c0_8 = arith.constant 0 : index
    %c0_9 = arith.constant 0 : index
    %18 = vector.load %arg3[%c0_7, %c0_8, %c0_9] : memref<1x16x128xf32, #tpu.memory_space<vmem>>, vector<1x16x128xf32>
    %19 = vector.shape_cast %18 : vector<1x16x128xf32> to vector<16x128xf32>
    %20 = vector.shape_cast %17 : vector<16x128xf32> to vector<1x16x128xf32>
    tpu.vector_store %arg3[%c0_7, %c0_8, %c0_9], %20 {strides = array<i32>} : memref<1x16x128xf32, #tpu.memory_space<vmem>>, vector<1x16x128xf32>,
    return
  }
  func.func @transform_0(%arg0: i32, %arg1: i32) -> (i32, i32) {
    %c1_i32 = arith.constant 1 : i32
    %0 = arith.muli %arg0, %c1_i32 : i32
    %1 = arith.addi %0, %arg1 : i32
    %c0_i32 = arith.constant 0 : i32
    %c0_i32_0 = arith.constant 0 : i32
    return %1, %c0_i32 : i32, i32
  }
  func.func @transform_1(%arg0: i32, %arg1: i32) -> (i32, i32, i32) {
    %c0_i32 = arith.constant 0 : i32
    %c0_i32_0 = arith.constant 0 : i32
    %c0_i32_1 = arith.constant 0 : i32
    return %arg0, %c0_i32, %c0_i32_0 : i32, i32, i32
  }
}

</mosaic_0001>

<bundles_post_ra>
// kernel: tpu_custom_call.1
= control target key start
LH: loop header
LB: loop body
LE: loop exit
PB: predicated region body
PF: predicated region fallthrough
CT: control target
= control target key end

     0   :  { %6 = vsyncpa [#allocation3], 0  ;;  %s187_s0 = inlined_call_operand.hbm [shape: f32[16,128], index: 0, kind: input, shape index: {}]   ;;  %s188_s1 = inlined_call_operand.hbm [shape: f32[1,16,128], index: 1, kind: output, shape index: {}]  }
   0x1   :  { %7 = vsyncpa [#allocation4], 0  ;;  %s16_s8 = sshll.u32 %s187_s0, 4  ;;  %s161_s9 = smov [#allocation2]   ;;  %s17_s8 = int_to_ptr.hbm [resolvable:$true] %s16_s8 }
   0x2   :  { %s18_s10 = sshll.u32 %s161_s9, 4  ;;  %s162_s11 = smov 128   ;;  %s19_s10 = int_to_ptr.vmem [resolvable:$true] %s18_s10 }
   0x3   :  { %s163_s12 = smov 8  }
   0x4   :  { %24 = dma.hbm_to_vmem [thread:$0]  %s17_s8, 256, %s19_s10, [#allocation3], %s162_s11, %s162_s11, %s163_s12  }
   0x5   :  { %157 = dma.done.wait [#allocation3], 256  }
   0x6   :  { %158 = vsyncadd [#allocation3], 4294967040  ;;  %v37_v0 = vld [vmem:[#allocation2] sm:$0xff]  ;;  %v38_v1 = vld [vmem:[#allocation2 + $0x8] sm:$0xff]  ;;  %s164_s0 = smov [#allocation5]   ;;  %s83_s16 = sshll.u32 %s188_s1, 4  ;;  %s84_s16 = int_to_ptr.hbm [resolvable:$true] %s83_s16 }
   0x7   :  { %v43_v2 = vand.u32 2147483647, %v37_v0  ;;  %v44_v3 = vand.u32 2147483647, %v38_v1  ;;  %v39_v15 = vmax.f32 %v37_v0, 0.0  ;;  %v40_v18 = vmax.f32 %v38_v1, 0.0 }
   0x8   :  { %s81_s13 = sshll.u32 %s164_s0, 4  ;;  %s82_s13 = int_to_ptr.vmem [resolvable:$true] %s81_s13 }
   0x9   :  { %v45_v4 = vsub.f32 0.0, %v43_v2  ;;  %v46_v5 = vsub.f32 0.0, %v44_v3  ;;  %v41_v22 = vsub.f32 %v39_v15, %v37_v0  ;;  %v42_v26 = vsub.f32 %v40_v18, %v38_v1 }
   0xb   :  { %v47_v6 = vmul.f32 1.442695, %v45_v4  ;;  %v49_v7 = vmul.f32 1.442695, %v46_v5 }
   0xd   :  { %101 = vpow2.f32 %v47_v6 }
   0xe   :  { %103 = vpow2.f32 %v49_v7 }
  0x13   :  { %v102_v8 = vpop.eup %101 }
  0x14   :  { %v104_v9 = vpop.eup %103  ;;  %v51_v10 = vadd.f32 1.0, %v102_v8  ;;  %v54_v11 = vmul.f32 -0.5, %v102_v8  ;;  %v57_v16 = vand.u32 2147483647, %v102_v8 }
  0x15   :  { %v60_v12 = vadd.f32 1.0, %v104_v9  ;;  %v63_v13 = vmul.f32 -0.5, %v104_v9  ;;  %v66_v19 = vand.u32 2147483647, %v104_v9 }
  0x16   :  { %105 = vlog2.f32 %v51_v10  ;;  %v55_v14 = vadd.f32 1.0, %v54_v11  ;;  %vm58_vm0 = vcmp.lt.f32.partialorder %v57_v16, 0.0004427343 }
  0x17   :  { %107 = vlog2.f32 %v60_v12  ;;  %v64_v17 = vadd.f32 1.0, %v63_v13  ;;  %vm67_vm1 = vcmp.lt.f32.partialorder %v66_v19, 0.0004427343 }
  0x18   :  { %v56_v20 = vmul.f32 %v102_v8, %v55_v14 }
  0x19   :  { %v65_v23 = vmul.f32 %v104_v9, %v64_v17 }
  0x1c   :  { %v106_v21 = vpop.eup %105 }
  0x1d   :  { %v108_v24 = vpop.eup %107  ;;  %v53_v25 = vmul.f32 0.6931472, %v106_v21 }
  0x1e   :  { %v62_v27 = vmul.f32 0.6931472, %v108_v24 }
  0x1f   :  { %v59_v28 = vsel %vm58_vm0, %v56_v20, %v53_v25 }
  0x20   :  { %v69_v29 = vadd.f32 %v59_v28, %v41_v22  ;;  %v68_v30 = vsel %vm67_vm1, %v65_v23, %v62_v27 }
  0x21   :  { %v70_v31 = vadd.f32 %v68_v30, %v42_v26 }
  0x22   :  { %75 = vst [vmem:[#allocation5] sm:$0xff] %v69_v29 }
  0x23   :  { %76 = vst [vmem:[#allocation5 + $0x8] sm:$0xff] %v70_v31 }
  0x24   :  { %89 = dma.vmem_to_hbm [thread:$0]  %s82_s13, 256, %s84_s16, [#allocation4], %s162_s11, %s162_s11, %s163_s12  }
  0x25   :  { %159 = dma.done.wait [#allocation4], 256  }
  0x26   :  { %160 = vsyncadd [#allocation4], 4294967040 }
  0x27   :  { %94 = vsyncpa [#allocation3], 1 }
  0x28   :  { %95 = vsyncpa [#allocation4], 1 }

</bundles_post_ra>
